<compile_context>
chip_gen: v7x
topology: tpu7x:2x2x1
jax: 0.10.0
libtpu: 0.0.40
codegen_flags: <defaults>
</compile_context>

<pallas_src>
import jax
import jax.numpy as jnp
from jax.experimental import pallas as pl
from jax.experimental.pallas import tpu as pltpu


_LRELU_SLOPE = 0.3


def _leaky_relu(x, slope=_LRELU_SLOPE):
    return jnp.where(x > 0, x, slope * x)


def _sigmoid(x):
    # EUP tanh path; numerically matches jax.nn.sigmoid in f32 and is robust
    # for large |x|.
    return 0.5 * jnp.tanh(0.5 * x) + 0.5


def discriminator_kernel(x_ref, c_ref, r_ref,
                         w0_ref, w1_ref, w2_ref, w3_ref, w4_ref,
                         b_ref, out_ref):
    """One (TB, .) batch tile of the full MLP forward.

    Layer 0 fuses the flatten/concat: [x | c | r] @ W0 is computed as
    x @ W0[:dx] + c @ W0[dx:dx+dc] + r * W0[dx+dc]  (r is the single trailing
    scalar feature of the Discriminator input).
    """
    dx = x_ref.shape[1]
    dc = c_ref.shape[1]
    d0 = w0_ref.shape[1]

    # ---- Layer 0: fused concat + Linear + LeakyReLU ----
    h = jnp.dot(x_ref[...], w0_ref[0:dx, :], preferred_element_type=jnp.float32)
    h = h + jnp.dot(c_ref[...], w0_ref[dx:dx + dc, :],
                    preferred_element_type=jnp.float32)
    h = h + r_ref[...] * w0_ref[dx + dc:dx + dc + 1, :]      # (TB,1)*(1,d0)
    h = _leaky_relu(h + b_ref[0:1, 0:d0])

    def lin(h, w_ref, layer_idx):
        n = w_ref.shape[1]
        return (jnp.dot(h, w_ref[...], preferred_element_type=jnp.float32)
                + b_ref[layer_idx:layer_idx + 1, 0:n])

    h = _leaky_relu(lin(h, w1_ref, 1))
    h = _leaky_relu(lin(h, w2_ref, 2))
    h = _leaky_relu(lin(h, w3_ref, 3))
    y = lin(h, w4_ref, 4)

    out_ref[...] = _sigmoid(y)


def discriminator_forward(x, c, r, params, *, block_b=512):
    """Flatten/cast are free-ish reshapes; the whole MLP runs in one kernel."""
    B = x.shape[0]
    x2 = x.reshape(B, -1).astype(jnp.float32)
    c2 = c.reshape(B, -1).astype(jnp.float32)
    r2 = r.reshape(B, -1).astype(jnp.float32)
    dx, dc, dr = x2.shape[1], c2.shape[1], r2.shape[1]
    assert dr == 1, "Discriminator takes a single scalar r per sample"

    ws = [w for (w, _) in params]
    bs = [b for (_, b) in params]
    assert len(ws) == 5
    assert ws[0].shape[0] == dx + dc + dr

    # Pack the 5 biases into one small VMEM buffer (fewer DMA descriptors).
    max_out = max(w.shape[1] for w in ws)
    b_pack = jnp.stack(
        [jnp.pad(b.reshape(-1), (0, max_out - b.reshape(-1).shape[0]))
         for b in bs]).astype(jnp.float32)                   # (5, max_out)

    # Batch tile: full batch if small, otherwise a multiple-of-8 streaming tile
    # whose double-buffered footprint is tiny vs. v7x's 64 MiB VMEM.
    TB = B if B <= block_b else block_b
    grid = (pl.cdiv(B, TB),)

    def batch_spec(f):
        return pl.BlockSpec((TB, f), lambda i: (i, 0))

    def resident_spec(shape):
        return pl.BlockSpec(shape, lambda i: (0, 0))   # constant -> DMA'd once

    out = pl.pallas_call(
        discriminator_kernel,
        out_shape=jax.ShapeDtypeStruct((B, 1), jnp.float32),
        grid=grid,
        in_specs=[
            batch_spec(dx), batch_spec(dc), batch_spec(dr),
            resident_spec(ws[0].shape), resident_spec(ws[1].shape),
            resident_spec(ws[2].shape), resident_spec(ws[3].shape),
            resident_spec(ws[4].shape),
            resident_spec(b_pack.shape),
        ],
        out_specs=pl.BlockSpec((TB, 1), lambda i: (i, 0)),
        compiler_params=pltpu.CompilerParams(
            dimension_semantics=("parallel",),        # megacore split on v7x
            vmem_limit_bytes=32 * 1024 * 1024,        # safe on 64 MiB v7x VMEM
        ),
    )(x2, c2, r2, *ws, b_pack)
    return out


def make_params(key, in_dim, d_hid):
    """Weights ~ N(0, 0.02) (matching Discriminator.init_normal, which only
    re-inits weights). Biases get small random values so the bias-add path is
    actually exercised (PyTorch's default Linear bias init is uniform, not 0)."""
    dims = [in_dim] + list(d_hid) + [1]
    params = []
    for i in range(len(dims) - 1):
        key, kw, kb = jax.random.split(key, 3)
        w = 0.02 * jax.random.normal(kw, (dims[i], dims[i + 1]), dtype=jnp.float32)
        b = 0.02 * jax.random.normal(kb, (1, dims[i + 1]), dtype=jnp.float32)
        params.append((w, b))
    return params


def reference_forward(x, c, r, params):
    """Pure-JAX reference mirroring the PyTorch forward exactly."""
    B = x.shape[0]
    v = jnp.concatenate(
        [x.reshape(B, -1),
         c.reshape(B, -1).astype(jnp.float32),
         r.reshape(B, -1).astype(jnp.float32)],
        axis=1).astype(jnp.float32)
    h = v
    for i, (w, b) in enumerate(params):
        h = h @ w + b
        if i < len(params) - 1:
            h = _leaky_relu(h)
    return jax.nn.sigmoid(h)


if __name__ == "__main__":
    # Small synthetic config implied by the forward:
    #   x flattens to input_dim = 2*4*4 = 32, num_classes = 4, r is one scalar
    #   per sample, d_hid = [64, 64, 32, 32].
    batch = 8
    num_classes = 4
    d_hid = [64, 64, 32, 32]
    x_shape = (batch, 2, 4, 4)
    input_dim = 2 * 4 * 4
    in_dim = input_dim + num_classes + 1

    key = jax.random.PRNGKey(0)
    kx, kc, kr, kp = jax.random.split(key, 4)

    x = jax.random.normal(kx, x_shape, dtype=jnp.float32)
    c_idx = jax.random.randint(kc, (batch,), 0, num_classes)
    c = jax.nn.one_hot(c_idx, num_classes, dtype=jnp.float32)   # .float() one-hots
    r = jax.random.uniform(kr, (batch, 1), dtype=jnp.float32)

    params = make_params(kp, in_dim, d_hid)

    y = discriminator_forward(x, c, r, params)
    y = jax.block_until_ready(y)

    y_ref = reference_forward(x, c, r, params)
    assert y.shape == (batch, 1), y.shape
    assert jnp.allclose(y, y_ref, atol=1e-5, rtol=1e-5), (y, y_ref)

    print("KERNEL_OK")
</pallas_src>

<mosaic_0001>
module attributes {stable_mosaic.version = 11 : i64} {
  func.func @discriminator_kernel(%arg0: i32, %arg1: memref<8x32xf32, #tpu.memory_space<vmem>>, %arg2: memref<8x4xf32, #tpu.memory_space<vmem>>, %arg3: memref<8x1xf32, #tpu.memory_space<vmem>>, %arg4: memref<37x64xf32, #tpu.memory_space<vmem>>, %arg5: memref<64x64xf32, #tpu.memory_space<vmem>>, %arg6: memref<64x32xf32, #tpu.memory_space<vmem>>, %arg7: memref<32x32xf32, #tpu.memory_space<vmem>>, %arg8: memref<32x1xf32, #tpu.memory_space<vmem>>, %arg9: memref<5x64xf32, #tpu.memory_space<vmem>>, %arg10: memref<8x1xf32, #tpu.memory_space<vmem>>) attributes {dimension_semantics = [#tpu.dimension_semantics<parallel>], iteration_bounds = array<i64: 1>, scalar_prefetch = 0 : i64, scratch_operands = 0 : i64, tpu.core_type = #tpu.core_type<tc>, window_params = [{transform_indices = @transform_0, window_bounds = array<i64: 8, 32>}, {transform_indices = @transform_1, window_bounds = array<i64: 8, 4>}, {transform_indices = @transform_2, window_bounds = array<i64: 8, 1>}, {pipeline_mode = #tpu.pipeline_mode<synchronous>, transform_indices = @transform_3, window_bounds = array<i64: 37, 64>}, {pipeline_mode = #tpu.pipeline_mode<synchronous>, transform_indices = @transform_4, window_bounds = array<i64: 64, 64>}, {pipeline_mode = #tpu.pipeline_mode<synchronous>, transform_indices = @transform_5, window_bounds = array<i64: 64, 32>}, {pipeline_mode = #tpu.pipeline_mode<synchronous>, transform_indices = @transform_6, window_bounds = array<i64: 32, 32>}, {pipeline_mode = #tpu.pipeline_mode<synchronous>, transform_indices = @transform_7, window_bounds = array<i64: 32, 1>}, {pipeline_mode = #tpu.pipeline_mode<synchronous>, transform_indices = @transform_8, window_bounds = array<i64: 5, 64>}, {transform_indices = @transform_9, window_bounds = array<i64: 8, 1>}]} {
    %c0 = arith.constant 0 : index
    %c0_0 = arith.constant 0 : index
    %0 = vector.load %arg1[%c0, %c0_0] : memref<8x32xf32, #tpu.memory_space<vmem>>, vector<8x32xf32>
    %c0_1 = arith.constant 0 : index
    %c0_2 = arith.constant 0 : index
    %1 = vector.load %arg4[%c0_1, %c0_2] : memref<37x64xf32, #tpu.memory_space<vmem>>, vector<32x64xf32>
    %cst = arith.constant dense<0.000000e+00> : vector<8x64xf32>
    %2 = tpu.matmul %0, %1, %cst {dimension_numbers = #tpu.dot_dimension_numbers<[1], [0], [0], [1], [0, 0, 1, 1], [], []>} : vector<8x32xf32>, vector<32x64xf32>, vector<8x64xf32> -> vector<8x64xf32>
    %c0_3 = arith.constant 0 : index
    %c0_4 = arith.constant 0 : index
    %3 = vector.load %arg2[%c0_3, %c0_4] : memref<8x4xf32, #tpu.memory_space<vmem>>, vector<8x4xf32>
    %c32 = arith.constant 32 : index
    %c0_5 = arith.constant 0 : index
    %4 = vector.load %arg4[%c32, %c0_5] : memref<37x64xf32, #tpu.memory_space<vmem>>, vector<4x64xf32>
    %cst_6 = arith.constant dense<0.000000e+00> : vector<8x64xf32>
    %5 = tpu.matmul %3, %4, %cst_6 {dimension_numbers = #tpu.dot_dimension_numbers<[1], [0], [0], [1], [0, 0, 1, 1], [], []>} : vector<8x4xf32>, vector<4x64xf32>, vector<8x64xf32> -> vector<8x64xf32>
    %6 = arith.addf %2, %5 : vector<8x64xf32>
    %c0_7 = arith.constant 0 : index
    %c0_8 = arith.constant 0 : index
    %7 = vector.load %arg3[%c0_7, %c0_8] : memref<8x1xf32, #tpu.memory_space<vmem>>, vector<8x1xf32>
    %c36 = arith.constant 36 : index
    %c0_9 = arith.constant 0 : index
    %8 = vector.load %arg4[%c36, %c0_9] : memref<37x64xf32, #tpu.memory_space<vmem>>, vector<1x64xf32>
    %9 = vector.broadcast %7 : vector<8x1xf32> to vector<8x64xf32>
    %10 = vector.broadcast %8 : vector<1x64xf32> to vector<8x64xf32>
    %11 = arith.mulf %9, %10 : vector<8x64xf32>
    %12 = arith.addf %6, %11 : vector<8x64xf32>
    %c0_10 = arith.constant 0 : index
    %c0_11 = arith.constant 0 : index
    %13 = vector.load %arg9[%c0_10, %c0_11] : memref<5x64xf32, #tpu.memory_space<vmem>>, vector<1x64xf32>
    %14 = vector.broadcast %13 : vector<1x64xf32> to vector<8x64xf32>
    %15 = arith.addf %12, %14 : vector<8x64xf32>
    %cst_12 = arith.constant 0.000000e+00 : f32
    %16 = vector.broadcast %cst_12 : f32 to vector<8x64xf32>
    %17 = arith.cmpf ogt, %15, %16 : vector<8x64xf32>
    %cst_13 = arith.constant 3.000000e-01 : f32
    %18 = vector.broadcast %cst_13 : f32 to vector<8x64xf32>
    %19 = arith.mulf %18, %15 : vector<8x64xf32>
    %20 = arith.select %17, %15, %19 : vector<8x64xi1>, vector<8x64xf32>
    %c0_14 = arith.constant 0 : index
    %c0_15 = arith.constant 0 : index
    %21 = vector.load %arg5[%c0_14, %c0_15] : memref<64x64xf32, #tpu.memory_space<vmem>>, vector<64x64xf32>
    %cst_16 = arith.constant dense<0.000000e+00> : vector<8x64xf32>
    %22 = tpu.matmul %20, %21, %cst_16 {dimension_numbers = #tpu.dot_dimension_numbers<[1], [0], [0], [1], [0, 0, 1, 1], [], []>} : vector<8x64xf32>, vector<64x64xf32>, vector<8x64xf32> -> vector<8x64xf32>
    %c1 = arith.constant 1 : index
    %c0_17 = arith.constant 0 : index
    %23 = vector.load %arg9[%c1, %c0_17] : memref<5x64xf32, #tpu.memory_space<vmem>>, vector<1x64xf32>
    %24 = vector.broadcast %23 : vector<1x64xf32> to vector<8x64xf32>
    %25 = arith.addf %22, %24 : vector<8x64xf32>
    %cst_18 = arith.constant 0.000000e+00 : f32
    %26 = vector.broadcast %cst_18 : f32 to vector<8x64xf32>
    %27 = arith.cmpf ogt, %25, %26 : vector<8x64xf32>
    %cst_19 = arith.constant 3.000000e-01 : f32
    %28 = vector.broadcast %cst_19 : f32 to vector<8x64xf32>
    %29 = arith.mulf %28, %25 : vector<8x64xf32>
    %30 = arith.select %27, %25, %29 : vector<8x64xi1>, vector<8x64xf32>
    %c0_20 = arith.constant 0 : index
    %c0_21 = arith.constant 0 : index
    %31 = vector.load %arg6[%c0_20, %c0_21] : memref<64x32xf32, #tpu.memory_space<vmem>>, vector<64x32xf32>
    %cst_22 = arith.constant dense<0.000000e+00> : vector<8x32xf32>
    %32 = tpu.matmul %30, %31, %cst_22 {dimension_numbers = #tpu.dot_dimension_numbers<[1], [0], [0], [1], [0, 0, 1, 1], [], []>} : vector<8x64xf32>, vector<64x32xf32>, vector<8x32xf32> -> vector<8x32xf32>
    %c2 = arith.constant 2 : index
    %c0_23 = arith.constant 0 : index
    %33 = vector.load %arg9[%c2, %c0_23] : memref<5x64xf32, #tpu.memory_space<vmem>>, vector<1x32xf32>
    %34 = vector.broadcast %33 : vector<1x32xf32> to vector<8x32xf32>
    %35 = arith.addf %32, %34 : vector<8x32xf32>
    %cst_24 = arith.constant 0.000000e+00 : f32
    %36 = vector.broadcast %cst_24 : f32 to vector<8x32xf32>
    %37 = arith.cmpf ogt, %35, %36 : vector<8x32xf32>
    %cst_25 = arith.constant 3.000000e-01 : f32
    %38 = vector.broadcast %cst_25 : f32 to vector<8x32xf32>
    %39 = arith.mulf %38, %35 : vector<8x32xf32>
    %40 = arith.select %37, %35, %39 : vector<8x32xi1>, vector<8x32xf32>
    %c0_26 = arith.constant 0 : index
    %c0_27 = arith.constant 0 : index
    %41 = vector.load %arg7[%c0_26, %c0_27] : memref<32x32xf32, #tpu.memory_space<vmem>>, vector<32x32xf32>
    %cst_28 = arith.constant dense<0.000000e+00> : vector<8x32xf32>
    %42 = tpu.matmul %40, %41, %cst_28 {dimension_numbers = #tpu.dot_dimension_numbers<[1], [0], [0], [1], [0, 0, 1, 1], [], []>} : vector<8x32xf32>, vector<32x32xf32>, vector<8x32xf32> -> vector<8x32xf32>
    %c3 = arith.constant 3 : index
    %c0_29 = arith.constant 0 : index
    %43 = vector.load %arg9[%c3, %c0_29] : memref<5x64xf32, #tpu.memory_space<vmem>>, vector<1x32xf32>
    %44 = vector.broadcast %43 : vector<1x32xf32> to vector<8x32xf32>
    %45 = arith.addf %42, %44 : vector<8x32xf32>
    %cst_30 = arith.constant 0.000000e+00 : f32
    %46 = vector.broadcast %cst_30 : f32 to vector<8x32xf32>
    %47 = arith.cmpf ogt, %45, %46 : vector<8x32xf32>
    %cst_31 = arith.constant 3.000000e-01 : f32
    %48 = vector.broadcast %cst_31 : f32 to vector<8x32xf32>
    %49 = arith.mulf %48, %45 : vector<8x32xf32>
    %50 = arith.select %47, %45, %49 : vector<8x32xi1>, vector<8x32xf32>
    %c0_32 = arith.constant 0 : index
    %c0_33 = arith.constant 0 : index
    %51 = vector.load %arg8[%c0_32, %c0_33] : memref<32x1xf32, #tpu.memory_space<vmem>>, vector<32x1xf32>
    %cst_34 = arith.constant dense<0.000000e+00> : vector<8x1xf32>
    %52 = tpu.matmul %50, %51, %cst_34 {dimension_numbers = #tpu.dot_dimension_numbers<[1], [0], [0], [1], [0, 0, 1, 1], [], []>} : vector<8x32xf32>, vector<32x1xf32>, vector<8x1xf32> -> vector<8x1xf32>
    %c4 = arith.constant 4 : index
    %c0_35 = arith.constant 0 : index
    %53 = vector.load %arg9[%c4, %c0_35] : memref<5x64xf32, #tpu.memory_space<vmem>>, vector<1x1xf32>
    %54 = vector.broadcast %53 : vector<1x1xf32> to vector<8x1xf32>
    %55 = arith.addf %52, %54 : vector<8x1xf32>
    %cst_36 = arith.constant 5.000000e-01 : f32
    %56 = vector.broadcast %cst_36 : f32 to vector<8x1xf32>
    %57 = arith.mulf %56, %55 : vector<8x1xf32>
    %58 = math.tanh %57 : vector<8x1xf32>
    %cst_37 = arith.constant 5.000000e-01 : f32
    %59 = vector.broadcast %cst_37 : f32 to vector<8x1xf32>
    %60 = arith.mulf %59, %58 : vector<8x1xf32>
    %cst_38 = arith.constant 5.000000e-01 : f32
    %61 = vector.broadcast %cst_38 : f32 to vector<8x1xf32>
    %62 = arith.addf %60, %61 : vector<8x1xf32>
    %c0_39 = arith.constant 0 : index
    %c0_40 = arith.constant 0 : index
    %63 = vector.load %arg10[%c0_39, %c0_40] : memref<8x1xf32, #tpu.memory_space<vmem>>, vector<8x1xf32>
    tpu.vector_store %arg10[%c0_39, %c0_40], %62 {strides = array<i32>} : memref<8x1xf32, #tpu.memory_space<vmem>>, vector<8x1xf32>,
    return
  }
  func.func @transform_0(%arg0: i32) -> (i32, i32) {
    %c0_i32 = arith.constant 0 : i32
    %c0_i32_0 = arith.constant 0 : i32
    return %arg0, %c0_i32 : i32, i32
  }
  func.func @transform_1(%arg0: i32) -> (i32, i32) {
    %c0_i32 = arith.constant 0 : i32
    %c0_i32_0 = arith.constant 0 : i32
    return %arg0, %c0_i32 : i32, i32
  }
  func.func @transform_2(%arg0: i32) -> (i32, i32) {
    %c0_i32 = arith.constant 0 : i32
    %c0_i32_0 = arith.constant 0 : i32
    return %arg0, %c0_i32 : i32, i32
  }
  func.func @transform_3(%arg0: i32) -> (i32, i32) {
    %c0_i32 = arith.constant 0 : i32
    %c0_i32_0 = arith.constant 0 : i32
    %c0_i32_1 = arith.constant 0 : i32
    return %c0_i32, %c0_i32_0 : i32, i32
  }
  func.func @transform_4(%arg0: i32) -> (i32, i32) {
    %c0_i32 = arith.constant 0 : i32
    %c0_i32_0 = arith.constant 0 : i32
    %c0_i32_1 = arith.constant 0 : i32
    return %c0_i32, %c0_i32_0 : i32, i32
  }
  func.func @transform_5(%arg0: i32) -> (i32, i32) {
    %c0_i32 = arith.constant 0 : i32
    %c0_i32_0 = arith.constant 0 : i32
    %c0_i32_1 = arith.constant 0 : i32
    return %c0_i32, %c0_i32_0 : i32, i32
  }
  func.func @transform_6(%arg0: i32) -> (i32, i32) {
    %c0_i32 = arith.constant 0 : i32
    %c0_i32_0 = arith.constant 0 : i32
    %c0_i32_1 = arith.constant 0 : i32
    return %c0_i32, %c0_i32_0 : i32, i32
  }
  func.func @transform_7(%arg0: i32) -> (i32, i32) {
    %c0_i32 = arith.constant 0 : i32
    %c0_i32_0 = arith.constant 0 : i32
    %c0_i32_1 = arith.constant 0 : i32
    return %c0_i32, %c0_i32_0 : i32, i32
  }
  func.func @transform_8(%arg0: i32) -> (i32, i32) {
    %c0_i32 = arith.constant 0 : i32
    %c0_i32_0 = arith.constant 0 : i32
    %c0_i32_1 = arith.constant 0 : i32
    return %c0_i32, %c0_i32_0 : i32, i32
  }
  func.func @transform_9(%arg0: i32) -> (i32, i32) {
    %c0_i32 = arith.constant 0 : i32
    %c0_i32_0 = arith.constant 0 : i32
    return %arg0, %c0_i32 : i32, i32
  }
}

</mosaic_0001>

<bundles_post_ra>
// kernel: tpu_custom_call.1
= control target key start
LH: loop header
LB: loop body
LE: loop exit
PB: predicated region body
PF: predicated region fallthrough
CT: control target
= control target key end

     0   :  { %14 = vsyncpa [#allocation3], 0  ;;  %s780_s30 = smov [#allocation2]   ;;  %s993_s0 = inlined_call_operand.hbm [shape: f32[8,32], index: 0, kind: input, shape index: {}]   ;;  %s994_s1 = inlined_call_operand.vmem [shape: f32[8,4], index: 1, kind: input, shape index: {}]   ;;  %s995_s2 = inlined_call_operand.vmem [shape: f32[8,1], index: 2, kind: input, shape index: {}]   ;;  %s996_s3 = inlined_call_operand.vmem [shape: f32[37,64], index: 3, kind: input, shape index: {}]   ;;  %s997_s4 = inlined_call_operand.vmem [shape: f32[64,64], index: 4, kind: input, shape index: {}]   ;;  %s998_s5 = inlined_call_operand.vmem [shape: f32[64,32], index: 5, kind: input, shape index: {}]   ;;  %s999_s6 = inlined_call_operand.vmem [shape: f32[32,32], index: 6, kind: input, shape index: {}]   ;;  %s1000_s7 = inlined_call_operand.vmem [shape: f32[32,1], index: 7, kind: input, shape index: {}]   ;;  %s1001_s8 = inlined_call_operand.vmem [shape: f32[5,64], index: 8, kind: input, shape index: {}]   ;;  %s1002_s9 = inlined_call_operand.vmem [shape: f32[8,1], index: 9, kind: output, shape index: {}]  }
   0x1   :  { %s21_s10 = sshll.u32 %s780_s30, 4  ;;  %s756_s13 = scalar_lea.hbm %s993_s0, 128  ;;  %s22_s10 = int_to_ptr.vmem [resolvable:$true] %s21_s10 }
   0x2   :  { %p757_p0 = scmp.ne.s32.totalorder %s993_s0, %s756_s13  ;;  %p760_p1 = scmp.lt.u32.totalorder %s756_s13, %s993_s0 }
   0x4   :  { %p762_p2 = pnand %p760_p1, %p757_p0 }
   0x6   :  { %765 = shalt.err (!%p762_p2)
}
   0x7   :  { %s766_s18 = scalar_lea.vmem %s22_s10, 128  ;;  %p771_p4 = scmp.lt.s32.totalorder %s22_s10, %s22_s10 }
   0x8   :  { %p767_p3 = scmp.ne.s32.totalorder %s22_s10, %s766_s18  ;;  %p772_p5 = scmp.lt.s32.totalorder %s766_s18, %s766_s18 }
   0xa   :  { %p773_p6 = por %p772_p5, %p771_p4 }
   0xc   :  { %p774_p7 = pnand %p773_p6, %p767_p3 }
   0xe   :  { %777 = shalt.err (!%p774_p7)
}
   0xf   :  { %24 = dma.hbm_to_vmem [thread:$0]  %s993_s0, 128, %s22_s10, [#allocation3]  }
  0x10   :  { %778 = dma.done.wait [#allocation3], 128  }
  0x11   :  { %779 = vsyncadd [#allocation3], 4294967168  ;;  %v781_v0 = vmov 0.0|0.0   ;;  %v782_v1 = vmov 0.0   ;;  %vm783_vm0 = vmmov 0   ;;  %v784_v2 = vmov 0  }
  0x12   :  { %706 = vmatprep.subr.bf16.mxu1 %v781_v0  ;;  %630 = vmatprep.subr.mxu0 %v782_v1  ;;  %vm55_vm1 = vcmask 1043456   ;;  %v45_v3 = vld [vmem:[%s996_s3] sm:$0xff]  ;;  %v46_v4 = vld [vmem:[%s996_s3 + $0x8] sm:$0xff]  ;;  %v47_v5 = vld [vmem:[%s996_s3 + $0x10] sm:$0xff]  ;;  %vm51_vm2 = vcmask 31744   ;;  %vm129_vm3 = vcmask 261120  }
  0x13   :  { %632 = vmatprep.mubr.msk.f32.mxu0 %vm783_vm0, %v782_v1  ;;  %643 = vmatprep.mubr.msk.f32.mxu1 %vm783_vm0, %v782_v1  ;;  %v707_v6 = vpack.c.bf16 %v46_v4, %v45_v3  ;;  %v48_v7 = vld [vmem:[%s996_s3 + $0x18] sm:$0xff]  ;;  %v50_v8 = vld [vmem:[%s996_s3 + $0x20] sm:$0xf]  ;;  %v226_v13 = vld [vmem:[%s997_s4 + $0x8] sm:$0xff]  ;;  %vm238_vm5 = vcmask 523264   ;;  %vm575_vm9 = vcmask 7168  }
  0x14   :  { %753 = vset.pattern.permute.xlu0 %v784_v2  ;;  %v49_v9 = vld [vmem:[%s994_s1] sm:$0xff]  ;;  %631 = vmatpush3.msk.msra.mxu0 %vm55_vm1, %v50_v8  ;;  %v710_v12 = vpack.c.bf16 %v48_v7, %v47_v5  ;;  %v227_v16 = vld [vmem:[%s997_s4 + $0x10] sm:$0xff]  ;;  %v228_v17 = vld [vmem:[%s997_s4 + $0x18] sm:$0xff] }
  0x15   :  { %v203_v10 = vld [vmem:[%s995_s2] sm:$0xff]  ;;  %708 = vmatpush3.bf16.msra.mxu1 %v707_v6  ;;  %633 = vmatmul.mubr.msk.f32.vlgmr.msra.gmra.mrb[0].mxu0 %vm51_vm2, %v49_v9  ;;  %v716_v18 = vpack.c.bf16 %v228_v17, %v227_v16  ;;  %v230_v20 = vld [vmem:[%s997_s4 + $0x28] sm:$0xff]  ;;  %v231_v22 = vld [vmem:[%s997_s4 + $0x30] sm:$0xff] }
  0x16   :  { %v225_v11 = vld [vmem:[%s997_s4] sm:$0xff]  ;;  %709 = vmatprep.subr.bf16.mxu1 %v781_v0  ;;  %207 = vperm.xlu0 %753, %v203_v10   ;;  %v232_v23 = vld [vmem:[%s997_s4 + $0x38] sm:$0xff]  ;;  %v316_v26 = vld [vmem:[%s998_s5 + $0x8] sm:$0xff] }
  0x17   :  { %v713_v14 = vpack.c.bf16 %v226_v13, %v225_v11  ;;  %712 = vmatprep.subr.bf16.mxu0 %v781_v0  ;;  %662 = vmatprep.mubr.msk.f32.mxu0 %vm783_vm0, %v782_v1  ;;  %v44_v15 = vld [vmem:[#allocation2] sm:$0xff]  ;;  %v722_v24 = vpack.c.bf16 %v232_v23, %v231_v22  ;;  %v317_v27 = vld [vmem:[%s998_s5 + $0x10] sm:$0xff]  ;;  %v318_v29 = vld [vmem:[%s998_s5 + $0x18] sm:$0xff] }
  0x18   :  { %v229_v19 = vld [vmem:[%s997_s4 + $0x20] sm:$0xff]  ;;  %v728_v30 = vpack.c.bf16 %v318_v29, %v317_v27  ;;  %v320_v32 = vld [vmem:[%s998_s5 + $0x28] sm:$0xff]  ;;  %v321_v47 = vld [vmem:[%s998_s5 + $0x30] sm:$0xff] }
  0x19   :  { %714 = vmatpush3.bf16.msra.mxu0 %v713_v14  ;;  %711 = vmatpush3.bf16.msra.mxu1 %v710_v12  ;;  %v719_v21 = vpack.c.bf16 %v230_v20, %v229_v19  ;;  %v315_v25 = vld [vmem:[%s998_s5] sm:$0xff]  ;;  %v322_v48 = vld [vmem:[%s998_s5 + $0x38] sm:$0xff]  ;;  %v405_v51 = vld [vmem:[%s999_s6 + $0x8] sm:$0xff] }
  0x1a   :  { %715 = vmatprep.subr.bf16.mxu0 %v781_v0  ;;  %724 = vmatprep.subr.bf16.mxu1 %v781_v0  ;;  %v725_v28 = vpack.c.bf16 %v316_v26, %v315_v25  ;;  %v319_v31 = vld [vmem:[%s998_s5 + $0x20] sm:$0xff]  ;;  %v734_v49 = vpack.c.bf16 %v322_v48, %v321_v47  ;;  %v406_v59 = vld [vmem:[%s999_s6 + $0x10] sm:$0xff]  ;;  %v407_v60 = vld [vmem:[%s999_s6 + $0x18] sm:$0xff] }
  0x1b   :  { %v731_v33 = vpack.c.bf16 %v320_v32, %v319_v31  ;;  %v585_v36 = vld [vmem:[%s996_s3 + $0x24] ss:$0 sm:$0xff]  ;;  %v586_v42 = vld [vmem:[%s1001_s8] ss:$0 sm:$0xff]  ;;  %v587_v53 = vld [vmem:[%s1001_s8 + $0x1] ss:$0 sm:$0xff]  ;;  %v740_v61 = vpack.c.bf16 %v407_v60, %v406_v59 }
  0x1c   :  { %644 = vmatmul.mubr.msk.f32.vlgmr.msra.gmra.mrb[0].mxu1 %vm129_vm3, %v44_v15  ;;  %v404_v50 = vld [vmem:[%s999_s6] sm:$0xff]  ;;  %v490_v63 = vld [vmem:[%s1000_s7 + $0x8] sm:$0xff]  ;;  %v491_v8 = vld [vmem:[%s1000_s7 + $0x10] sm:$0xff] }
  0x1d   :  { %681 = vmatprep.mubr.msk.f32.mxu1 %vm783_vm0, %v782_v1  ;;  %717 = vmatpush3.bf16.msra.mxu0 %v716_v18  ;;  %v737_v52 = vpack.c.bf16 %v405_v51, %v404_v50  ;;  %v489_v62 = vld [vmem:[%s1000_s7] sm:$0xff] }
  0x1e   :  { %718 = vmatprep.subr.bf16.mxu0 %v781_v0  ;;  %726 = vmatpush3.bf16.msra.mxu1 %v725_v28  ;;  %v743_v2 = vpack.c.bf16 %v490_v63, %v489_v62  ;;  %v591_v10 = vld [vmem:[%s1001_s8 + $0x3] ss:$0 sm:$0xff]  ;;  %v593_v16 = vld [vmem:[%s1001_s8 + $0x4] ss:$0 sm:$0xff] }
  0x1f   :  { %727 = vmatprep.subr.bf16.mxu1 %v781_v0 }
  0x21   :  { %720 = vmatpush3.bf16.msra.mxu0 %v719_v21 }
  0x22   :  { %721 = vmatprep.subr.bf16.mxu0 %v781_v0  ;;  %729 = vmatpush3.bf16.msra.mxu1 %v728_v30 }
  0x23   :  { %730 = vmatprep.subr.bf16.mxu1 %v781_v0 }
  0x25   :  { %723 = vmatpush3.bf16.msra.mxu0 %v722_v24 }
  0x26   :  { %736 = vmatprep.subr.bf16.mxu0 %v781_v0  ;;  %732 = vmatpush3.bf16.msra.mxu1 %v731_v33 }
  0x27   :  { %733 = vmatprep.subr.bf16.mxu1 %v781_v0 }
  0x2a   :  { %735 = vmatpush3.bf16.msra.mxu1 %v734_v49 }
  0x2b   :  { %742 = vmatprep.subr.bf16.mxu1 %v781_v0 }
  0x95   :  { %v208_v37 = vpop.permute.xlu0 %207 }
  0x96   :  { %v214_v38 = vmul.f32 %v585_v36, %v208_v37 }
  0xe8   :  { %v125_v34 = vpop.f32.mrb[0].mxu0 }
  0xe9   :  { %v634_v35 = vpop.f32.mrb[1].mxu0 }
  0xef   :  { %v199_v39 = vpop.f32.mrb[0].mxu1 }
  0xf0   :  { %v200_v40 = vadd.f32 %v199_v39, %v125_v34  ;;  %v645_v41 = vpop.f32.mrb[1].mxu1 }
  0xf2   :  { %v215_v43 = vadd.f32 %v214_v38, %v200_v40 }
  0xf4   :  { %v221_v44 = vadd.f32 %v586_v42, %v215_v43 }
  0xf6   :  { %v223_v45 = vmul.f32 0.3, %v221_v44  ;;  %vm222_vm4 = vcmp.gt.f32.partialorder %v221_v44, 0.0 }
  0xf8   :  { %v224_v46 = vsel %vm222_vm4, %v221_v44, %v223_v45 }
  0xf9   :  { %663 = vmatmul.mubr.msk.f32.vlgmr.msra.gmra.mrb[2].mxu0 %vm238_vm5, %v224_v46 }
  0xfa   :  { %692 = vmatprep.mubr.msk.f32.mxu0 %vm783_vm0, %v782_v1  ;;  %738 = vmatpush3.bf16.msra.mxu0 %v737_v52 }
  0xfb   :  { %739 = vmatprep.subr.bf16.mxu0 %v781_v0 }
  0xfe   :  { %741 = vmatpush3.bf16.msra.mxu0 %v740_v61 }
 0x1cc   :  { %v308_v54 = vpop.f32.mrb[2].mxu0 }
 0x1cd   :  { %v309_v55 = vadd.f32 %v587_v53, %v308_v54  ;;  %v664_v56 = vpop.f32.mrb[3].mxu0 }
 0x1cf   :  { %vm312_vm6 = vcmp.gt.f32.partialorder %v309_v55, 0.0  ;;  %v313_v57 = vmul.f32 0.3, %v309_v55 }
 0x1d1   :  { %v314_v58 = vsel %vm312_vm6, %v309_v55, %v313_v57 }
 0x1d2   :  { %682 = vmatmul.mubr.msk.f32.vlgmr.msra.gmra.mrb[2].mxu1 %vm238_vm5, %v314_v58 }
 0x1d3   :  { %703 = vmatprep.mubr.msk.f32.mxu1 %vm783_vm0, %v782_v1  ;;  %744 = vmatpush3.bf16.msra.mxu1 %v743_v2  ;;  %v589_v1 = vld [vmem:[%s1001_s8 + $0x2] ss:$0 sm:$0xff] }
 0x1d4   :  { %745 = vmatprep.subr.bf16.mxu1 %v781_v0  ;;  %v492_v0 = vld [vmem:[%s1000_s7 + $0x18] sm:$0xff] }
 0x1d5   :  { %v746_v9 = vpack.c.bf16 %v492_v0, %v491_v8 }
 0x1d7   :  { %747 = vmatpush3.bf16.msra.mxu1 %v746_v9 }
 0x2a5   :  { %v397_v3 = vpop.f32.mrb[2].mxu1 }
 0x2a6   :  { %v398_v4 = vadd.f32 %v589_v1, %v397_v3  ;;  %v683_v5 = vpop.f32.mrb[3].mxu1 }
 0x2a8   :  { %vm401_vm7 = vcmp.gt.f32.partialorder %v398_v4, 0.0  ;;  %v402_v6 = vmul.f32 0.3, %v398_v4 }
 0x2aa   :  { %v403_v7 = vsel %vm401_vm7, %v398_v4, %v402_v6 }
 0x2ab   :  { %693 = vmatmul.mubr.msk.f32.vlgmr.msra.gmra.mrb[4].mxu0 %vm129_vm3, %v403_v7 }
 0x37e   :  { %v482_v11 = vpop.f32.mrb[4].mxu0 }
 0x37f   :  { %v483_v12 = vadd.f32 %v591_v10, %v482_v11  ;;  %v694_v13 = vpop.f32.mrb[5].mxu0 }
 0x381   :  { %vm486_vm8 = vcmp.gt.f32.partialorder %v483_v12, 0.0  ;;  %v487_v14 = vmul.f32 0.3, %v483_v12 }
 0x383   :  { %v488_v15 = vsel %vm486_vm8, %v483_v12, %v487_v14 }
 0x384   :  { %704 = vmatmul.mubr.msk.f32.vlgmr.msra.gmra.mrb[4].mxu1 %vm129_vm3, %v488_v15 }
 0x457   :  { %v567_v17 = vpop.f32.mrb[4].mxu1 }
 0x458   :  { %v568_v18 = vadd.f32 %v593_v16, %v567_v17  ;;  %v705_v19 = vpop.f32.mrb[5].mxu1 }
 0x45a   :  { %v571_v20 = vmul.f32 0.5, %v568_v18 }
 0x45c   :  { %754 = vtanh.f32 %v571_v20 }
 0x466   :  { %v755_v21 = vpop.eup %754 }
 0x467   :  { %v573_v22 = vmul.f32 0.5, %v755_v21 }
 0x469   :  { %v574_v23 = vadd.f32 0.5, %v573_v22 }
 0x46b   :  { %576 = vst.msk [vmem:[%s1002_s9] sm:$0xff] %vm575_vm9, %v574_v23 }
 0x46c   :  { %581 = vsyncpa [#allocation3], 1 }

</bundles_post_ra>
